<compile_context>
chip_gen: v7x
topology: tpu7x:2x2x1
jax: 0.10.0
libtpu: 0.0.40
codegen_flags: <defaults>
</compile_context>

<pallas_src>
import functools

import jax
import jax.numpy as jnp
from jax.experimental import pallas as pl
from jax.experimental.pallas import tpu as pltpu

P_DROP = 0.5
_SCALE2 = 1.0 / ((1.0 - P_DROP) ** 2)   # dropout scale applied after squaring


def _transpose_dropout_square_kernel(seed_ref, x_ref, o_ref, *, M, N):
    """One (1, TM, TN) input tile -> (1, TN, TM) transposed output tile.

    seed_ref : SMEM scalar-prefetch ref, shape (1,), int32
    x_ref    : VMEM tile (1, TM, TN) of x1 in its native (B, M, N) layout
    o_ref    : VMEM tile (1, TN, TM) of the (B, N, M) output
    """
    b = pl.program_id(0)   # batch
    i = pl.program_id(1)   # tile index along N (output rows / sublanes)
    j = pl.program_id(2)   # tile index along M (output lanes)

    tn, tm = o_ref.shape[1], o_ref.shape[2]

    # Fused in-tile transpose (XLU) of the current block.
    xt = jnp.swapaxes(x_ref[0], 0, 1).astype(jnp.float32)        # (TN, TM)

    # Global element index of each output element -> counter-based hash
    # ("lowbias32") mixed with the seed; top bit decides keep/drop (p = 0.5).
    rn = jax.lax.broadcasted_iota(jnp.int32, (tn, tm), 0) + i * tn
    cm = jax.lax.broadcasted_iota(jnp.int32, (tn, tm), 1) + j * tm
    flat = ((b * N + rn) * M + cm).astype(jnp.uint32)

    h = flat ^ seed_ref[0].astype(jnp.uint32)
    h = (h ^ (h >> 16)) * jnp.uint32(0x7FEB352D)
    h = (h ^ (h >> 15)) * jnp.uint32(0x846CA68B)
    h = h ^ (h >> 16)
    keep = (h & jnp.uint32(0x80000000)) != jnp.uint32(0)   # P(keep) = 0.5

    # x2 = dropout(x1.T); x3 = x2 * x2  -> fold 1/(1-p)^2 into the square.
    out = jnp.where(keep, xt * xt * jnp.float32(_SCALE2), jnp.float32(0.0))
    o_ref[0] = out.astype(o_ref.dtype)


def _pick_tile(dim, target=512):
    """Largest legal tile <= target: full dim if small, otherwise a multiple of
    128 that divides dim (satisfies lane + sublane alignment for BOTH the
    input block (.., TM, TN) and the transposed output block (.., TN, TM))."""
    if dim <= target:
        return dim
    for t in range(target - target % 128, 0, -128):
        if dim % t == 0:
            return t
    return dim   # full dimension is always a legal block extent


@jax.jit
def model_forward(x1, seed):
    # PyTorch: x2 = x1.transpose(-1, -2): (B, M, N) -> (B, N, M)
    B, M, N = x1.shape
    tm = _pick_tile(M)
    tn = _pick_tile(N)

    kernel = functools.partial(_transpose_dropout_square_kernel, M=M, N=N)

    out = pl.pallas_call(
        kernel,
        out_shape=jax.ShapeDtypeStruct((B, N, M), x1.dtype),
        grid_spec=pltpu.PrefetchScalarGridSpec(
            num_scalar_prefetch=1,
            grid=(B, pl.cdiv(N, tn), pl.cdiv(M, tm)),
            # index_maps receive the scalar-prefetch ref as a trailing arg.
            in_specs=[pl.BlockSpec((1, tm, tn),
                                   lambda b, i, j, sref: (b, j, i))],
            out_specs=pl.BlockSpec((1, tn, tm),
                                   lambda b, i, j, sref: (b, i, j)),
        ),
        compiler_params=pltpu.CompilerParams(
            dimension_semantics=("parallel", "parallel", "parallel")),
    )(seed, x1)
    return out


if __name__ == "__main__":
    key = jax.random.PRNGKey(0)
    # Original module used x1 = torch.randn(1, 2, 3); pick a small TPU-friendly
    # analogue (B=2, M=128, N=8) so the transposed output (2, 8, 128) is
    # lane-dense.
    x1 = jax.random.normal(key, (2, 128, 8), dtype=jnp.float32)
    seed = jnp.array([0], dtype=jnp.int32)

    out = model_forward(x1, seed)
    jax.block_until_ready(out)

    # Sanity checks: shape matches transposed input; values are >= 0 (square);
    # kept positions equal (x / (1 - p))^2 of the transposed input.
    assert out.shape == (2, 8, 128), out.shape
    assert bool(jnp.all(out >= 0.0))
    xt = jnp.swapaxes(x1, -1, -2)
    expected_kept = (xt * xt) * _SCALE2
    mask_nz = out != 0.0
    assert bool(jnp.allclose(jnp.where(mask_nz, out, 0.0),
                             jnp.where(mask_nz, expected_kept, 0.0),
                             rtol=1e-5, atol=1e-6))

    print("KERNEL_OK")
</pallas_src>

<mosaic_0001>
module attributes {stable_mosaic.version = 11 : i64} {
  func.func @_transpose_dropout_square_kernel(%arg0: i32, %arg1: i32, %arg2: i32, %arg3: memref<1xi32, #tpu.memory_space<smem>>, %arg4: memref<1x128x8xf32, #tpu.memory_space<vmem>>, %arg5: memref<1x8x128xf32, #tpu.memory_space<vmem>>) attributes {dimension_semantics = [#tpu.dimension_semantics<parallel>, #tpu.dimension_semantics<parallel>, #tpu.dimension_semantics<parallel>], iteration_bounds = array<i64: 2, 1, 1>, scalar_prefetch = 1 : i64, scratch_operands = 0 : i64, tpu.core_type = #tpu.core_type<tc>, window_params = [{transform_indices = @transform_0, window_bounds = array<i64: 1, 128, 8>}, {transform_indices = @transform_1, window_bounds = array<i64: 1, 8, 128>}]} {
    %c0 = arith.constant 0 : index
    %c0_0 = arith.constant 0 : index
    %c0_1 = arith.constant 0 : index
    %0 = vector.load %arg4[%c0, %c0_0, %c0_1] : memref<1x128x8xf32, #tpu.memory_space<vmem>>, vector<1x128x8xf32>
    %1 = vector.shape_cast %0 : vector<1x128x8xf32> to vector<128x8xf32>
    %2 = tpu.transpose %1, [1, 0] : vector<128x8xf32> -> vector<8x128xf32>
    %3 = tpu.iota {dimensions = array<i32: 0>} : vector<8x128xi32>
    %c8_i32 = arith.constant 8 : i32
    %4 = arith.muli %arg1, %c8_i32 : i32
    %5 = vector.broadcast %4 : i32 to vector<8x128xi32>
    %6 = arith.addi %3, %5 : vector<8x128xi32>
    %7 = tpu.iota {dimensions = array<i32: 1>} : vector<8x128xi32>
    %c128_i32 = arith.constant 128 : i32
    %8 = arith.muli %arg2, %c128_i32 : i32
    %9 = vector.broadcast %8 : i32 to vector<8x128xi32>
    %10 = arith.addi %7, %9 : vector<8x128xi32>
    %c8_i32_2 = arith.constant 8 : i32
    %11 = arith.muli %arg0, %c8_i32_2 : i32
    %12 = vector.broadcast %11 : i32 to vector<8x128xi32>
    %13 = arith.addi %12, %6 : vector<8x128xi32>
    %c128_i32_3 = arith.constant 128 : i32
    %14 = vector.broadcast %c128_i32_3 : i32 to vector<8x128xi32>
    %15 = arith.muli %13, %14 : vector<8x128xi32>
    %16 = arith.addi %15, %10 : vector<8x128xi32>
    %c0_4 = arith.constant 0 : index
    %17 = memref.load %arg3[%c0_4] : memref<1xi32, #tpu.memory_space<smem>>
    %18 = vector.broadcast %17 : i32 to vector<8x128xi32>
    %19 = arith.xori %16, %18 : vector<8x128xi32>
    %c16_i32 = arith.constant 16 : i32
    %20 = vector.broadcast %c16_i32 : i32 to vector<8x128xi32>
    %21 = arith.shrui %19, %20 : vector<8x128xi32>
    %22 = arith.xori %19, %21 : vector<8x128xi32>
    %c2146121005_i32 = arith.constant 2146121005 : i32
    %23 = vector.broadcast %c2146121005_i32 : i32 to vector<8x128xi32>
    %24 = arith.muli %22, %23 : vector<8x128xi32>
    %c15_i32 = arith.constant 15 : i32
    %25 = vector.broadcast %c15_i32 : i32 to vector<8x128xi32>
    %26 = arith.shrui %24, %25 : vector<8x128xi32>
    %27 = arith.xori %24, %26 : vector<8x128xi32>
    %c-2073254261_i32 = arith.constant -2073254261 : i32
    %28 = vector.broadcast %c-2073254261_i32 : i32 to vector<8x128xi32>
    %29 = arith.muli %27, %28 : vector<8x128xi32>
    %c16_i32_5 = arith.constant 16 : i32
    %30 = vector.broadcast %c16_i32_5 : i32 to vector<8x128xi32>
    %31 = arith.shrui %29, %30 : vector<8x128xi32>
    %32 = arith.xori %29, %31 : vector<8x128xi32>
    %c-2147483648_i32 = arith.constant -2147483648 : i32
    %33 = vector.broadcast %c-2147483648_i32 : i32 to vector<8x128xi32>
    %34 = arith.andi %32, %33 : vector<8x128xi32>
    %c0_i32 = arith.constant 0 : i32
    %35 = vector.broadcast %c0_i32 : i32 to vector<8x128xi32>
    %36 = arith.cmpi ne, %34, %35 : vector<8x128xi32>
    %37 = arith.mulf %2, %2 : vector<8x128xf32>
    %cst = arith.constant 4.000000e+00 : f32
    %38 = vector.broadcast %cst : f32 to vector<8x128xf32>
    %39 = arith.mulf %37, %38 : vector<8x128xf32>
    %cst_6 = arith.constant 0.000000e+00 : f32
    %40 = vector.broadcast %cst_6 : f32 to vector<8x128xf32>
    %41 = arith.select %36, %39, %40 : vector<8x128xi1>, vector<8x128xf32>
    %c0_7 = arith.constant 0 : index
    %c0_8 = arith.constant 0 : index
    %c0_9 = arith.constant 0 : index
    %42 = vector.load %arg5[%c0_7, %c0_8, %c0_9] : memref<1x8x128xf32, #tpu.memory_space<vmem>>, vector<1x8x128xf32>
    %43 = vector.shape_cast %42 : vector<1x8x128xf32> to vector<8x128xf32>
    %44 = vector.shape_cast %41 : vector<8x128xf32> to vector<1x8x128xf32>
    tpu.vector_store %arg5[%c0_7, %c0_8, %c0_9], %44 {strides = array<i32>} : memref<1x8x128xf32, #tpu.memory_space<vmem>>, vector<1x8x128xf32>,
    return
  }
  func.func @transform_0(%arg0: i32, %arg1: i32, %arg2: i32, %arg3: memref<1xi32, #tpu.memory_space<smem>>) -> (i32, i32, i32) {
    %c0_i32 = arith.constant 0 : i32
    return %arg0, %arg2, %arg1 : i32, i32, i32
  }
  func.func @transform_1(%arg0: i32, %arg1: i32, %arg2: i32, %arg3: memref<1xi32, #tpu.memory_space<smem>>) -> (i32, i32, i32) {
    %c0_i32 = arith.constant 0 : i32
    return %arg0, %arg1, %arg2 : i32, i32, i32
  }
}

</mosaic_0001>

<bundles_post_ra>
// kernel: model_forward.1
= control target key start
LH: loop header
LB: loop body
LE: loop exit
PB: predicated region body
PF: predicated region fallthrough
CT: control target
= control target key end

     0   :  { %s643_s0 = inlined_call_operand.<no memory space> [shape: s32[1], index: 0, kind: input, shape index: {}]   ;;  %s644_s1 = inlined_call_operand.vmem [shape: f32[2,128,8], index: 1, kind: input, shape index: {}]   ;;  %s645_s2 = inlined_call_operand.hbm [shape: f32[2,8,128], index: 2, kind: output, shape index: {}]  }
   0x1   :  { %7 = sst [smem:[#allocation3]] %s643_s0 }
   0x2   :  { %8 = vsyncpa [#allocation5], 0 }
   0x3   :  { %10 = vsyncpa [#allocation5 + $0x1], 0  ;;  %s512_s11 = smov 0   ;;  %s514_s12 = smov 0  }
   0x4   :  { %s516_s13 = smov 0   ;;  %s518_s14 = smov 0  }
   0x5   :  { %s520_s15 = smov 0   ;;  %s522_s16 = smov 0  }
   0x6 LB: > { %s344_s0 = sadd.s32 4294967295, %s491_s16   ;;  %s345_s17 = sadd.s32 4294967294, %s491_s16   ;;  %s491_s16 = sphi %s522_s16, %s16_s16   ;;  %s487_s15 = sphi %s520_s15, %s652_s15   ;;  %s483_s14 = sphi %s518_s14, %s651_s14   ;;  %s479_s13 = sphi %s516_s13, %s650_s13   ;;  %s475_s12 = sphi %s514_s12, %s649_s12   ;;  %s471_s11 = sphi %s512_s11, %s648_s11  }
   0x7   : > { %s35_s18 = sadd.s32 1, %s487_s15  ;;  %s76_s19 = sadd.s32 1, %s479_s13 }
   0x8   : > { %p37_p0 = scmp.ge.s32.totalorder %s35_s18, 2  ;;  %p86_p1 = scmp.ne.s32.totalorder %s479_s13, %s475_s12 }
   0x9   : > { %p87_p2 = scmp.eq.s32.totalorder %s344_s0, 1  ;;  %p92_p3 = scmp.ne.s32.totalorder %s475_s12, %s471_s11 }
   0xa   : > { %s654_s18 = smov (%p37_p0, %s35_s18), 0  ;;  %p93_p5 = scmp.eq.s32.totalorder %s345_s17, 1 }
   0xb   : > { %p552_p4 = por %p87_p2, %p86_p1  ;;  %s69_s21 = ssub.s32 %s487_s15, %s654_s18 }
   0xc   : > { %p348_p6 = scmp.ge.s32.totalorder %s491_s16, 1  ;;  %p74_p7 = scmp.eq.s32.totalorder %s69_s21, 0 }
   0xd   : > { %p559_p8 = por %p93_p5, %p92_p3  ;;  %p127_p9 = scmp.lt.s32.totalorder %s491_s16, 3 }
   0xe   : > { %s565_s23 = scalar_select %p74_p7, %s479_s13, %s76_s19  }
   0xf   : > { %p128_p10 = pnand %p348_p6, %p127_p9 }
  0x10   : > { %p155_p11 = scmp.lt.s32.totalorder (!%p128_p10), %s483_s14, 1  ;;  %v215_v16 = vlaneseq (!%p128_p10)  ;;  %s352_s29 = sshll.u32 (!%p128_p10), %s483_s14, 3 }
  0x11   : > { %131 = sbr.rel (%p128_p10) target bundleno = 177 (0xb1), region = 24  ;;  %v226_v18 = vstv (!%p128_p10), %s352_s29  ;;  %s230_s30 = sld [smem:[#allocation3]] (!%p128_p10) }
  0x12   : > { %v216_v17 = vshrl.u32 (!%p128_p10), %v215_v16, 7  ;;  %v221_v20 = vand.u32 (!%p128_p10), 127, %v215_v16  ;;  %s151_s3 = sand.u32 (!%p128_p10), 1, %s475_s12   ;;  %s354_s5 = sshll.u32 (!%p128_p10), %s483_s14, 7 }
  0x13   : > { %s349_s4 = sshll.u32 (!%p128_p10), %s151_s3, 3  ;;  %s596_s10 = scalar_lea.hbm (!%p128_p10), %s645_s2, %s354_s5 }
  0x14   : > { %v227_v19 = vadd.s32 (!%p128_p10), %v226_v18, %v216_v17  ;;  %s153_s6 = scalar_lea.vmem (!%p128_p10), [#allocation4], %s349_s4  ;;  %s248_s0 = scalar_lea.sflag (!%p128_p10), [#allocation5], %s151_s3 }
  0x15   : > { %s263_s7 = sshll.u32 (!%p128_p10), %s153_s6, 4  ;;  %s598_s7 = int_to_ptr.vmem [resolvable:$true] %s263_s7 }
  0x16   : > { %v228_v21 = vmul.u32 (!%p128_p10), 128, %v227_v19  ;;  %s413_s17 = scalar_lea.vmem (!%p128_p10), %s598_s7, 128 }
  0x17   : > { %v231_v23 = vstv (!%p128_p10), %s230_s30  ;;  %p414_p12 = scmp.ne.s32.totalorder (!%p128_p10), %s598_s7, %s413_s17 }
  0x18   : > { %s156_s24 = scalar_select %p155_p11, %s483_s14, 1  ;;  %v229_v22 = vadd.s32 %v228_v21, %v221_v20 }
  0x19   : > { %p415_p13 = pnand %p414_p12, %p552_p4  ;;  %s493_s14 = smov [#allocation4]  }
  0x1a   : > { %s357_s25 = sshll.u32 %s156_s24, 7  ;;  %v232_v24 = vxor.u32 %v231_v23, %v229_v22  ;;  %s417_s19 = sshll.u32 %s493_s14, 4  ;;  %s418_s19 = int_to_ptr.vmem [resolvable:$false] %s417_s19 }
  0x1b   : > { %s572_s28 = scalar_lea.vmem %s644_s1, %s357_s25  ;;  %p416_p0 = pneg %p415_p13 }
  0x1c   : > { %v167_v0 = vld [vmem:[%s572_s28] sm:$0xff]  ;;  %v168_v1 = vld [vmem:[%s572_s28 + $0x8] sm:$0xff]  ;;  %v169_v2 = vld [vmem:[%s572_s28 + $0x10] sm:$0xff]  ;;  %v233_v25 = vshrl.u32 %v232_v24, 16  ;;  %s419_s21 = scalar_lea.vmem %s418_s19, 256  ;;  %p420_p1 = scmp.lt.s32.totalorder %s598_s7, %s418_s19 }
  0x1d   : > { %183 = vxpose.xlu0.b32.start [1/16] (narrow) %v167_v0, 8  ;;  %v170_v3 = vld [vmem:[%s572_s28 + $0x18] sm:$0xff]  ;;  %v171_v4 = vld [vmem:[%s572_s28 + $0x20] sm:$0xff]  ;;  %v172_v5 = vld [vmem:[%s572_s28 + $0x28] sm:$0xff]  ;;  %p421_p2 = scmp.lt.s32.totalorder %s419_s21, %s413_s17 }
  0x1e   : > { %v173_v6 = vld [vmem:[%s572_s28 + $0x30] sm:$0xff]  ;;  %v174_v7 = vld [vmem:[%s572_s28 + $0x38] sm:$0xff]  ;;  %v175_v8 = vld [vmem:[%s572_s28 + $0x40] sm:$0xff]  ;;  %v234_v26 = vxor.u32 %v233_v25, %v232_v24 }
  0x1f   : > { %v176_v9 = vld [vmem:[%s572_s28 + $0x48] sm:$0xff]  ;;  %v177_v10 = vld [vmem:[%s572_s28 + $0x50] sm:$0xff]  ;;  %v178_v11 = vld [vmem:[%s572_s28 + $0x58] sm:$0xff]  ;;  %p422_p3 = por %p421_p2, %p420_p1 }
  0x20   : > { %v179_v12 = vld [vmem:[%s572_s28 + $0x60] sm:$0xff]  ;;  %v180_v13 = vld [vmem:[%s572_s28 + $0x68] sm:$0xff]  ;;  %v181_v14 = vld [vmem:[%s572_s28 + $0x70] sm:$0xff]  ;;  %v235_v27 = vmul.u32 2146121005, %v234_v26 }
  0x21   : > { %184 = vxpose.xlu0.b32.cont [2/16] (narrow) %v168_v1, 8  ;;  %v182_v15 = vld [vmem:[%s572_s28 + $0x78] sm:$0xff]  ;;  %p423_p5 = pnand %p422_p3, %p416_p0 }
  0x22   : > { %v236_v28 = vshrl.u32 %v235_v27, 15 }
  0x24   : > { %v237_v29 = vxor.u32 %v236_v28, %v235_v27 }
  0x25   : > { %185 = vxpose.xlu0.b32.cont [3/16] (narrow) %v169_v2, 8 }
  0x26   : > { %v238_v30 = vmul.u32 2221713035, %v237_v29 }
  0x28   : > { %v239_v31 = vshrl.u32 %v238_v30, 16 }
  0x29   : > { %186 = vxpose.xlu0.b32.cont [4/16] (narrow) %v170_v3, 8 }
  0x2a   : > { %v240_v32 = vxor.u32 %v239_v31, %v238_v30 }
  0x2c   : > { %v241_v33 = vand.u32 2147483648, %v240_v32 }
  0x2d   : > { %187 = vxpose.xlu0.b32.cont [5/16] (narrow) %v171_v4, 8 }
  0x2e   : > { %vm242_vm0 = vcmp.ne.s32.totalorder %v241_v33, 0 }
  0x31   : > { %188 = vxpose.xlu0.b32.cont [6/16] (narrow) %v172_v5, 8 }
  0x35   : > { %189 = vxpose.xlu0.b32.cont [7/16] (narrow) %v173_v6, 8 }
  0x39   : > { %190 = vxpose.xlu0.b32.cont [8/16] (narrow) %v174_v7, 8 }
  0x3d   : > { %191 = vxpose.xlu0.b32.cont [9/16] (narrow) %v175_v8, 8 }
  0x41   : > { %192 = vxpose.xlu0.b32.cont [10/16] (narrow) %v176_v9, 8 }
  0x45   : > { %193 = vxpose.xlu0.b32.cont [11/16] (narrow) %v177_v10, 8 }
  0x49   : > { %194 = vxpose.xlu0.b32.cont [12/16] (narrow) %v178_v11, 8 }
  0x4d   : > { %195 = vxpose.xlu0.b32.cont [13/16] (narrow) %v179_v12, 8 }
  0x51   : > { %196 = vxpose.xlu0.b32.cont [14/16] (narrow) %v180_v13, 8 }
  0x55   : > { %197 = vxpose.xlu0.b32.cont [15/16] (narrow) %v181_v14, 8 }
  0x59   : > { %198 = vxpose.xlu0.b32.end [16/16] (narrow) %v182_v15, 8 }
  0x9d   : > { %v199_v34 = vpop.trf.xlu0 }
  0x9e   : > { %v243_v35 = vmul.f32 %v199_v34, %v199_v34 }
  0xa0   : > { %v244_v36 = vmul.f32 4.0, %v243_v35 }
  0xa2   : > { %v245_v37 = vsel %vm242_vm0, %v244_v36, 0.0 }
  0xa3   : > { %246 = vst [vmem:[%s153_s6] sm:$0xff] %v245_v37 }
  0xa4   : > { %426 = shalt.err (!%p423_p5)
}
  0xa5   : > { %s427_s24 = scalar_lea.hbm %s596_s10, 128  ;;  %s431_s27 = scalar_lea.hbm %s645_s2, 256 }
  0xa6   : > { %p428_p6 = scmp.ne.s32.totalorder %s596_s10, %s427_s24  ;;  %p432_p10 = scmp.lt.u32.totalorder %s596_s10, %s645_s2 }
  0xa7   : > { %p433_p11 = scmp.lt.u32.totalorder %s431_s27, %s427_s24  ;;  %p435_p13 = scmp.lt.u32.totalorder %s427_s24, %s596_s10 }
  0xa8   : > { %p429_p7 = pnand %p428_p6, %p552_p4 }
  0xa9   : > { %p434_p12 = por %p433_p11, %p432_p10 }
  0xaa   : > { %p430_p9 = pneg %p429_p7 }
  0xab   : > { %p436_p0 = por %p435_p13, %p434_p12 }
  0xad   : > { %p437_p1 = pnand %p436_p0, %p430_p9 }
  0xaf   : > { %440 = shalt.err (!%p437_p1)
}
  0xb0   : > { %358 = dma.vmem_to_hbm [thread:$0]  (%p552_p4), %s598_s7, 128, %s596_s10, %s248_s0  }
  0xb1 PF: > { %p364_p2 = scmp.ge.s32.totalorder %s491_s16, 2  ;;  %s275_s30 = sand.u32 1, %s471_s11  }
  0xb2   : > { %s276_s3 = scalar_lea.sflag [#allocation5], %s275_s30 }
  0xb3   : > { %p361_p3 = pnand %p364_p2, %p559_p8 }
  0xb5   : > { %466 = dma.done.wait (!%p361_p3), %s276_s3, 128  }
  0xb6   : > { %468 = vsyncadd (!%p361_p3), %s276_s3, 4294967168  ;;  %s16_s16 = sadd.s32 1, %s491_s16   ;;  %s648_s11 = smov %s475_s12 }
  0xb7   : > { %p13_p5 = scmp.ge.s32.totalorder %s16_s16, 4   ;;  %s649_s12 = smov %s479_s13 }
  0xb8   : > { %s650_s13 = smov %s565_s23  ;;  %s651_s14 = smov %s487_s15 }
  0xb9   : > { %s652_s15 = smov %s654_s18  ;;  %15 = sbr.rel (!%p13_p5) target bundleno = 6 (0x6), region = 59 }
  0xc0   :  { %281 = vsyncpa [#allocation5], 1 }
  0xc1   :  { %283 = vsyncpa [#allocation5 + $0x1], 1 }

</bundles_post_ra>
